<compile_context>
chip_gen: v6e
topology: v6e:2x2x1
jax: 0.10.0
libtpu: 0.0.40
codegen_flags: <defaults>
</compile_context>

<pallas_src>
import jax
import jax.numpy as jnp
import numpy as np
from jax.experimental import pallas as pl
from jax.experimental.pallas import tpu as pltpu


def _to_rgb_vpu_kernel(w_ref, b_ref, x_ref, o_ref):
    # w_ref: (Cout, Cin) SMEM, wt_scale already folded in
    # b_ref: (Cout,)     SMEM
    # x_ref: (Cin, tile) VMEM   o_ref: (Cout, tile) VMEM
    cout, cin = w_ref.shape
    x = x_ref[...].astype(jnp.float32)                 # one lane-dense load
    for c in range(cout):                              # tiny static unroll (Cout*Cin MACs, VPU)
        acc = x[0:1, :] * w_ref[c, 0]
        for k in range(1, cin):
            acc = acc + x[k:k + 1, :] * w_ref[c, k]
        o_ref[c:c + 1, :] = (acc + b_ref[c]).astype(o_ref.dtype)


def _to_rgb_mxu_kernel(w_ref, b_ref, x_ref, o_ref):
    # w_ref: (Cout, Cin) VMEM (wt_scale folded), b_ref: (Cout,) SMEM
    # x_ref: (Cin, tile) VMEM, o_ref: (Cout, tile) VMEM
    cout = w_ref.shape[0]
    acc = jnp.dot(w_ref[...], x_ref[...], preferred_element_type=jnp.float32)
    for c in range(cout):
        o_ref[c:c + 1, :] = (acc[c:c + 1, :] + b_ref[c]).astype(o_ref.dtype)


def gen_final_block(x_nchw, weight_oihw, bias, *, gain=float(np.sqrt(2.0))):
    """Pallas implementation of GenFinalBlock.forward.

    x_nchw:      (N, Cin, H, W) float32
    weight_oihw: (Cout, Cin, 1, 1) float32  (nn.Conv2d weight layout)
    bias:        (1, Cout, 1, 1) float32
    returns:     (N, Cout, H, W) float32
    """
    n, cin, h, w = x_nchw.shape
    cout = weight_oihw.shape[0]
    hw = h * w
    wt_scale = gain / float(np.sqrt(cin * 1 * 1))      # fanIn = Cin*kh*kw

    # Fold the equalized-LR scale into the tiny weight (commutes with the conv).
    w_mat = weight_oihw.reshape(cout, cin).astype(jnp.float32) * wt_scale
    b_vec = bias.reshape(cout).astype(jnp.float32)

    # Channels-first view: pure reshape, no transpose / pad / extra HBM traffic.
    x_view = x_nchw.reshape(n, cin, hw)

    # Largest lane-dense spatial tile dividing HW (capped to keep the
    # double-buffered VMEM footprint small on all generations, incl. v7x).
    tile = hw                                          # full-extent fallback (always legal)
    for cand in (2048, 1024, 512, 256, 128):
        if hw % cand == 0:
            tile = cand
            break
    grid = (n, hw // tile)

    use_mxu = cin > 16
    kernel = _to_rgb_mxu_kernel if use_mxu else _to_rgb_vpu_kernel
    w_spec = (pl.BlockSpec((cout, cin), lambda b, s: (0, 0)) if use_mxu
              else pl.BlockSpec(memory_space=pltpu.MemorySpace.SMEM))

    cost = pl.CostEstimate(
        flops=2 * n * hw * cin * cout,
        transcendentals=0,
        bytes_accessed=4 * (n * hw * (cin + cout) + cin * cout + cout),
    )

    out = pl.pallas_call(
        kernel,
        out_shape=jax.ShapeDtypeStruct((n, cout, hw), x_nchw.dtype),
        grid=grid,
        in_specs=[
            w_spec,
            pl.BlockSpec(memory_space=pltpu.MemorySpace.SMEM),
            pl.BlockSpec((pl.Squeezed(), cin, tile), lambda b, s: (b, 0, s)),
        ],
        out_specs=pl.BlockSpec((pl.Squeezed(), cout, tile), lambda b, s: (b, 0, s)),
        compiler_params=pltpu.CompilerParams(
            dimension_semantics=("parallel", "parallel")),
        cost_estimate=cost,
    )(w_mat, b_vec, x_view)

    return out.reshape(n, cout, h, w)


if __name__ == "__main__":
    # Shapes implied by GenFinalBlock(in_filters, out_dim) with a 1x1 conv.
    N, C_IN, H, W = 2, 4, 16, 16
    OUT_DIM = 3

    key = jax.random.PRNGKey(0)
    kx, kw = jax.random.split(key)

    x = jax.random.normal(kx, (N, C_IN, H, W), dtype=jnp.float32)
    # nn.init.normal_(self.conv.weight): standard normal, deterministic here.
    conv_w = jax.random.normal(kw, (OUT_DIM, C_IN, 1, 1), dtype=jnp.float32)
    # nn.init.constant_(self.bias, 0): zeros, shape (1, Cout, 1, 1).
    conv_b = jnp.zeros((1, OUT_DIM, 1, 1), dtype=jnp.float32)

    out = gen_final_block(x, conv_w, conv_b)
    out = jax.block_until_ready(out)

    # Pure-JAX reference of the PyTorch forward (NCHW 1x1 conv).
    wt_scale = np.sqrt(2.0) / np.sqrt(C_IN)
    ref = jnp.einsum("nchw,oc->nohw", x * wt_scale,
                     conv_w.reshape(OUT_DIM, C_IN)) + conv_b
    assert out.shape == (N, OUT_DIM, H, W)
    np.testing.assert_allclose(np.asarray(out), np.asarray(ref),
                               rtol=1e-5, atol=1e-5)

    print("KERNEL_OK")
</pallas_src>

<mosaic_0001>
module attributes {stable_mosaic.version = 11 : i64} {
  func.func @_to_rgb_vpu_kernel(%arg0: i32, %arg1: i32, %arg2: memref<3x4xf32, #tpu.memory_space<smem>>, %arg3: memref<3xf32, #tpu.memory_space<smem>>, %arg4: memref<1x4x256xf32, #tpu.memory_space<vmem>>, %arg5: memref<1x3x256xf32, #tpu.memory_space<vmem>>) attributes {dimension_semantics = [#tpu.dimension_semantics<parallel>, #tpu.dimension_semantics<parallel>], iteration_bounds = array<i64: 2, 1>, scalar_prefetch = 0 : i64, scratch_operands = 0 : i64, tpu.core_type = #tpu.core_type<tc>, window_params = [{transform_indices = @transform_0, window_bounds = array<i64: 3, 4>}, {transform_indices = @transform_1, window_bounds = array<i64: 3>}, {transform_indices = @transform_2, window_bounds = array<i64: 1, 4, 256>}, {transform_indices = @transform_3, window_bounds = array<i64: 1, 3, 256>}]} {
    %c0 = arith.constant 0 : index
    %c0_0 = arith.constant 0 : index
    %c0_1 = arith.constant 0 : index
    %0 = vector.load %arg4[%c0, %c0_0, %c0_1] : memref<1x4x256xf32, #tpu.memory_space<vmem>>, vector<1x4x256xf32>
    %1 = vector.shape_cast %0 : vector<1x4x256xf32> to vector<4x256xf32>
    %2 = vector.extract_strided_slice %1 {offsets = [0, 0], sizes = [1, 256], strides = [1, 1]} : vector<4x256xf32> to vector<1x256xf32>
    %c0_2 = arith.constant 0 : index
    %c0_3 = arith.constant 0 : index
    %3 = memref.load %arg2[%c0_2, %c0_3] : memref<3x4xf32, #tpu.memory_space<smem>>
    %4 = vector.broadcast %3 : f32 to vector<1x256xf32>
    %5 = arith.mulf %2, %4 : vector<1x256xf32>
    %6 = vector.extract_strided_slice %1 {offsets = [1, 0], sizes = [1, 256], strides = [1, 1]} : vector<4x256xf32> to vector<1x256xf32>
    %c0_4 = arith.constant 0 : index
    %c1 = arith.constant 1 : index
    %7 = memref.load %arg2[%c0_4, %c1] : memref<3x4xf32, #tpu.memory_space<smem>>
    %8 = vector.broadcast %7 : f32 to vector<1x256xf32>
    %9 = arith.mulf %6, %8 : vector<1x256xf32>
    %10 = arith.addf %5, %9 : vector<1x256xf32>
    %11 = vector.extract_strided_slice %1 {offsets = [2, 0], sizes = [1, 256], strides = [1, 1]} : vector<4x256xf32> to vector<1x256xf32>
    %c0_5 = arith.constant 0 : index
    %c2 = arith.constant 2 : index
    %12 = memref.load %arg2[%c0_5, %c2] : memref<3x4xf32, #tpu.memory_space<smem>>
    %13 = vector.broadcast %12 : f32 to vector<1x256xf32>
    %14 = arith.mulf %11, %13 : vector<1x256xf32>
    %15 = arith.addf %10, %14 : vector<1x256xf32>
    %16 = vector.extract_strided_slice %1 {offsets = [3, 0], sizes = [1, 256], strides = [1, 1]} : vector<4x256xf32> to vector<1x256xf32>
    %c0_6 = arith.constant 0 : index
    %c3 = arith.constant 3 : index
    %17 = memref.load %arg2[%c0_6, %c3] : memref<3x4xf32, #tpu.memory_space<smem>>
    %18 = vector.broadcast %17 : f32 to vector<1x256xf32>
    %19 = arith.mulf %16, %18 : vector<1x256xf32>
    %20 = arith.addf %15, %19 : vector<1x256xf32>
    %c0_7 = arith.constant 0 : index
    %21 = memref.load %arg3[%c0_7] : memref<3xf32, #tpu.memory_space<smem>>
    %22 = vector.broadcast %21 : f32 to vector<1x256xf32>
    %23 = arith.addf %20, %22 : vector<1x256xf32>
    %c0_8 = arith.constant 0 : index
    %c0_9 = arith.constant 0 : index
    %c0_10 = arith.constant 0 : index
    %24 = vector.load %arg5[%c0_8, %c0_9, %c0_10] : memref<1x3x256xf32, #tpu.memory_space<vmem>>, vector<1x1x256xf32>
    %25 = vector.shape_cast %24 : vector<1x1x256xf32> to vector<1x256xf32>
    %26 = vector.shape_cast %23 : vector<1x256xf32> to vector<1x1x256xf32>
    tpu.vector_store %arg5[%c0_8, %c0_9, %c0_10], %26 {strides = array<i32>} : memref<1x3x256xf32, #tpu.memory_space<vmem>>, vector<1x1x256xf32>,
    %27 = vector.extract_strided_slice %1 {offsets = [0, 0], sizes = [1, 256], strides = [1, 1]} : vector<4x256xf32> to vector<1x256xf32>
    %c1_11 = arith.constant 1 : index
    %c0_12 = arith.constant 0 : index
    %28 = memref.load %arg2[%c1_11, %c0_12] : memref<3x4xf32, #tpu.memory_space<smem>>
    %29 = vector.broadcast %28 : f32 to vector<1x256xf32>
    %30 = arith.mulf %27, %29 : vector<1x256xf32>
    %31 = vector.extract_strided_slice %1 {offsets = [1, 0], sizes = [1, 256], strides = [1, 1]} : vector<4x256xf32> to vector<1x256xf32>
    %c1_13 = arith.constant 1 : index
    %c1_14 = arith.constant 1 : index
    %32 = memref.load %arg2[%c1_13, %c1_14] : memref<3x4xf32, #tpu.memory_space<smem>>
    %33 = vector.broadcast %32 : f32 to vector<1x256xf32>
    %34 = arith.mulf %31, %33 : vector<1x256xf32>
    %35 = arith.addf %30, %34 : vector<1x256xf32>
    %36 = vector.extract_strided_slice %1 {offsets = [2, 0], sizes = [1, 256], strides = [1, 1]} : vector<4x256xf32> to vector<1x256xf32>
    %c1_15 = arith.constant 1 : index
    %c2_16 = arith.constant 2 : index
    %37 = memref.load %arg2[%c1_15, %c2_16] : memref<3x4xf32, #tpu.memory_space<smem>>
    %38 = vector.broadcast %37 : f32 to vector<1x256xf32>
    %39 = arith.mulf %36, %38 : vector<1x256xf32>
    %40 = arith.addf %35, %39 : vector<1x256xf32>
    %41 = vector.extract_strided_slice %1 {offsets = [3, 0], sizes = [1, 256], strides = [1, 1]} : vector<4x256xf32> to vector<1x256xf32>
    %c1_17 = arith.constant 1 : index
    %c3_18 = arith.constant 3 : index
    %42 = memref.load %arg2[%c1_17, %c3_18] : memref<3x4xf32, #tpu.memory_space<smem>>
    %43 = vector.broadcast %42 : f32 to vector<1x256xf32>
    %44 = arith.mulf %41, %43 : vector<1x256xf32>
    %45 = arith.addf %40, %44 : vector<1x256xf32>
    %c1_19 = arith.constant 1 : index
    %46 = memref.load %arg3[%c1_19] : memref<3xf32, #tpu.memory_space<smem>>
    %47 = vector.broadcast %46 : f32 to vector<1x256xf32>
    %48 = arith.addf %45, %47 : vector<1x256xf32>
    %c0_20 = arith.constant 0 : index
    %c1_21 = arith.constant 1 : index
    %c0_22 = arith.constant 0 : index
    %49 = vector.load %arg5[%c0_20, %c1_21, %c0_22] : memref<1x3x256xf32, #tpu.memory_space<vmem>>, vector<1x1x256xf32>
    %50 = vector.shape_cast %49 : vector<1x1x256xf32> to vector<1x256xf32>
    %51 = vector.shape_cast %48 : vector<1x256xf32> to vector<1x1x256xf32>
    tpu.vector_store %arg5[%c0_20, %c1_21, %c0_22], %51 {strides = array<i32>} : memref<1x3x256xf32, #tpu.memory_space<vmem>>, vector<1x1x256xf32>,
    %52 = vector.extract_strided_slice %1 {offsets = [0, 0], sizes = [1, 256], strides = [1, 1]} : vector<4x256xf32> to vector<1x256xf32>
    %c2_23 = arith.constant 2 : index
    %c0_24 = arith.constant 0 : index
    %53 = memref.load %arg2[%c2_23, %c0_24] : memref<3x4xf32, #tpu.memory_space<smem>>
    %54 = vector.broadcast %53 : f32 to vector<1x256xf32>
    %55 = arith.mulf %52, %54 : vector<1x256xf32>
    %56 = vector.extract_strided_slice %1 {offsets = [1, 0], sizes = [1, 256], strides = [1, 1]} : vector<4x256xf32> to vector<1x256xf32>
    %c2_25 = arith.constant 2 : index
    %c1_26 = arith.constant 1 : index
    %57 = memref.load %arg2[%c2_25, %c1_26] : memref<3x4xf32, #tpu.memory_space<smem>>
    %58 = vector.broadcast %57 : f32 to vector<1x256xf32>
    %59 = arith.mulf %56, %58 : vector<1x256xf32>
    %60 = arith.addf %55, %59 : vector<1x256xf32>
    %61 = vector.extract_strided_slice %1 {offsets = [2, 0], sizes = [1, 256], strides = [1, 1]} : vector<4x256xf32> to vector<1x256xf32>
    %c2_27 = arith.constant 2 : index
    %c2_28 = arith.constant 2 : index
    %62 = memref.load %arg2[%c2_27, %c2_28] : memref<3x4xf32, #tpu.memory_space<smem>>
    %63 = vector.broadcast %62 : f32 to vector<1x256xf32>
    %64 = arith.mulf %61, %63 : vector<1x256xf32>
    %65 = arith.addf %60, %64 : vector<1x256xf32>
    %66 = vector.extract_strided_slice %1 {offsets = [3, 0], sizes = [1, 256], strides = [1, 1]} : vector<4x256xf32> to vector<1x256xf32>
    %c2_29 = arith.constant 2 : index
    %c3_30 = arith.constant 3 : index
    %67 = memref.load %arg2[%c2_29, %c3_30] : memref<3x4xf32, #tpu.memory_space<smem>>
    %68 = vector.broadcast %67 : f32 to vector<1x256xf32>
    %69 = arith.mulf %66, %68 : vector<1x256xf32>
    %70 = arith.addf %65, %69 : vector<1x256xf32>
    %c2_31 = arith.constant 2 : index
    %71 = memref.load %arg3[%c2_31] : memref<3xf32, #tpu.memory_space<smem>>
    %72 = vector.broadcast %71 : f32 to vector<1x256xf32>
    %73 = arith.addf %70, %72 : vector<1x256xf32>
    %c0_32 = arith.constant 0 : index
    %c2_33 = arith.constant 2 : index
    %c0_34 = arith.constant 0 : index
    %74 = vector.load %arg5[%c0_32, %c2_33, %c0_34] : memref<1x3x256xf32, #tpu.memory_space<vmem>>, vector<1x1x256xf32>
    %75 = vector.shape_cast %74 : vector<1x1x256xf32> to vector<1x256xf32>
    %76 = vector.shape_cast %73 : vector<1x256xf32> to vector<1x1x256xf32>
    tpu.vector_store %arg5[%c0_32, %c2_33, %c0_34], %76 {strides = array<i32>} : memref<1x3x256xf32, #tpu.memory_space<vmem>>, vector<1x1x256xf32>,
    return
  }
  func.func @transform_0(%arg0: i32, %arg1: i32) -> (i32, i32) {
    %c0_i32 = arith.constant 0 : i32
    %c0_i32_0 = arith.constant 0 : i32
    %c0_i32_1 = arith.constant 0 : i32
    return %c0_i32, %c0_i32_0 : i32, i32
  }
  func.func @transform_1(%arg0: i32, %arg1: i32) -> i32 {
    %c0_i32 = arith.constant 0 : i32
    %c0_i32_0 = arith.constant 0 : i32
    return %c0_i32 : i32
  }
  func.func @transform_2(%arg0: i32, %arg1: i32) -> (i32, i32, i32) {
    %c0_i32 = arith.constant 0 : i32
    %c0_i32_0 = arith.constant 0 : i32
    return %arg0, %c0_i32, %arg1 : i32, i32, i32
  }
  func.func @transform_3(%arg0: i32, %arg1: i32) -> (i32, i32, i32) {
    %c0_i32 = arith.constant 0 : i32
    %c0_i32_0 = arith.constant 0 : i32
    return %arg0, %c0_i32, %arg1 : i32, i32, i32
  }
}

</mosaic_0001>

<bundles_post_ra>
// kernel: tpu_custom_call.1
= control target key start
LH: loop header
LB: loop body
LE: loop exit
PB: predicated region body
PF: predicated region fallthrough
CT: control target
= control target key end

     0   :  { %8 = vsyncpa [#allocation4], 0  ;;  %s936_s0 = inlined_call_operand.hbm [shape: f32[3,4], index: 0, kind: input, shape index: {}]   ;;  %s937_s1 = inlined_call_operand.vmem [shape: f32[3], index: 1, kind: input, shape index: {}]   ;;  %s938_s2 = inlined_call_operand.hbm [shape: f32[2,4,256], index: 2, kind: input, shape index: {}]   ;;  %s939_s3 = inlined_call_operand.vmem [shape: f32[2,3,256], index: 3, kind: output, shape index: {}]  }
   0x1   :  { %9 = vsyncpa [#allocation5], 0 }
   0x2   :  { %10 = vsyncpa [#allocation3], 0 }
   0x3   :  { %12 = vsyncpa [#allocation3 + $0x1], 0  ;;  %s767_s12 = smov 0   ;;  %s769_s13 = smov 0  }
   0x4   :  { %s771_s14 = smov 0   ;;  %s773_s15 = smov 0  }
   0x5   :  { %s775_s16 = smov 0   ;;  %s777_s17 = smov 0  }
   0x6 LB: > { %s509_s18 = sadd.s32 4294967295, %s741_s17   ;;  %p94_p0 = scmp.ne.s32.totalorder %s725_s13, %s721_s12  ;;  %s741_s17 = sphi %s777_s17, %s18_s17   ;;  %s737_s16 = sphi %s775_s16, %s952_s16   ;;  %s733_s15 = sphi %s773_s15, %s951_s15   ;;  %s729_s14 = sphi %s771_s14, %s950_s14   ;;  %s725_s13 = sphi %s769_s13, %s949_s13   ;;  %s721_s12 = sphi %s767_s12, %s948_s12  }
   0x7   : > { %p797_p1 = scmp.eq.s32.totalorder %s509_s18, 0  ;;  %p511_p2 = scmp.ge.s32.totalorder %s741_s17, 1 }
   0x8   : > { %p133_p3 = scmp.lt.s32.totalorder %s741_s17, 3  ;;  %s155_s24 = sshll.u32 %s937_s1, 4  ;;  %s156_s24 = int_to_ptr.vmem [resolvable:$true] %s155_s24 }
   0x9   : > { %p805_p4 = por %p797_p1, %p94_p0  ;;  %s30_s26 = sadd.s32 1, %s737_s16 }
   0xa   : > { %p809_p5 = pnand %p511_p2, %p133_p3  ;;  %p825_p8 = scmp.ge.s32.totalorder %s30_s26, 2 }
   0xb   : > { %s743_s28 = smov [#allocation2]   ;;  %s640_s4 = scalar_lea.vmem %s156_s24, 16 }
   0xc   : > { %p562_p6 = pneg %p809_p5  ;;  %p641_p9 = scmp.ne.s32.totalorder %s156_s24, %s640_s4 }
   0xd   : > { %p648_p13 = scmp.lt.s32.totalorder %s156_s24, %s156_s24  ;;  %p649_p0 = scmp.lt.s32.totalorder %s640_s4, %s640_s4 }
   0xe   : > { %p820_p7 = pnand %p562_p6, %p797_p1 }
   0xf   : > { %p650_p2 = por %p649_p0, %p648_p13 }
  0x10   : > { %565 = dma.hbm_to_smem (!%p820_p7), %s936_s0, 64, %s743_s28, [#allocation4]  }
  0x11   : > { %p642_p10 = pneg %p820_p7 }
  0x13   : > { %p643_p11 = pnand %p642_p10, %p641_p9 }
  0x15   : > { %p644_p12 = pneg %p643_p11 }
  0x17   : > { %p651_p3 = pnand %p650_p2, %p644_p12 }
  0x19   : > { %654 = shalt.err (!%p651_p3)
}
  0x1a   : > { %s744_s5 = smov [#allocation6]   ;;  %s954_s26 = smov (%p825_p8, %s30_s26), 0 }
  0x1b   : > { %568 = dma.vmem_to_smem (!%p820_p7), %s156_s24, 16, %s744_s5, [#allocation5]  }
  0x1c   : > { %s81_s6 = sadd.s32 1, %s729_s14  ;;  %p88_p6 = scmp.ne.s32.totalorder %s729_s14, %s725_s13 }
  0x1d   : > { %s76_s7 = ssub.s32 %s737_s16, %s954_s26  ;;  %p89_p9 = scmp.eq.s32.totalorder %s741_s17, 0 }
  0x1e   : > { %p79_p10 = scmp.eq.s32.totalorder %s76_s7, 0  ;;  %p575_p11 = scmp.lt.s32.totalorder %s741_s17, 2 }
  0x1f   : > { %p90_p12 = por %p89_p9, %p88_p6  ;;  %s166_s8 = sand.u32 1, %s729_s14  }
  0x20   : > { %s851_s9 = scalar_select %p79_p10, %s729_s14, %s81_s6  }
  0x21   : > { %s515_s10 = sshll.u32 %s166_s8, 3  ;;  %s550_s11 = sshll.u32 %s737_s16, 7 }
  0x22   : > { %s178_s22 = scalar_lea.hbm %s938_s2, %s550_s11  ;;  %s170_s23 = scalar_lea.vmem [#allocation7], %s515_s10 }
  0x23   : > { %s180_s24 = sshll.u32 %s170_s23, 4  ;;  %p857_p7 = pnand %p575_p11, %p90_p12  ;;  %s181_s24 = int_to_ptr.vmem [resolvable:$true] %s180_s24 }
  0x24   : > { %s167_s27 = scalar_lea.sflag [#allocation3], %s166_s8  ;;  %s668_s28 = scalar_lea.vmem %s181_s24, 128 }
  0x25   : > { %p657_p8 = pneg %p857_p7  ;;  %p669_p13 = scmp.ne.s32.totalorder %s181_s24, %s668_s28 }
  0x26   : > { %s745_s29 = smov [#allocation7]  }
  0x27   : > { %p671_p0 = pnand %p669_p13, %p657_p8  ;;  %s673_s30 = sshll.u32 %s745_s29, 4  ;;  %s674_s30 = int_to_ptr.vmem [resolvable:$false] %s673_s30 }
  0x28   : > { %s675_s4 = scalar_lea.vmem %s674_s30, 256  ;;  %p676_p3 = scmp.lt.s32.totalorder %s181_s24, %s674_s30 }
  0x29   : > { %p672_p2 = pneg %p671_p0  ;;  %p677_p6 = scmp.lt.s32.totalorder %s675_s4, %s668_s28 }
  0x2b   : > { %p678_p9 = por %p677_p6, %p676_p3 }
  0x2d   : > { %p679_p10 = pnand %p678_p9, %p672_p2 }
  0x2f   : > { %682 = shalt.err (!%p679_p10)
}
  0x30   : > { %572 = dma.hbm_to_vmem [thread:$0]  (!%p857_p7), %s178_s22, 128, %s181_s24, %s167_s27  }
  0x31   : > { %189 = sbr.rel (%p809_p5) target bundleno = 98 (0x62), region = 32 }
  0x36   : > { %708 = dma.done.wait (%p797_p1), [#allocation4], 64  }
  0x37   : > { %710 = vsyncadd (%p797_p1), [#allocation4], 4294967232 }
  0x38   : > { %712 = dma.done.wait (%p797_p1), [#allocation5], 16  }
  0x39   : > { %714 = vsyncadd (%p797_p1), [#allocation5], 4294967280  ;;  %s199_s5 = sand.u32 1, %s725_s13  }
  0x3a   : > { %s521_s6 = sshll.u32 %s199_s5, 3  ;;  %s200_s7 = scalar_lea.sflag [#allocation3], %s199_s5 }
  0x3b   : > { %s203_s8 = scalar_lea.vmem [#allocation7], %s521_s6 }
  0x3c   : > { %716 = dma.done.wait (%p805_p4), %s200_s7, 128  }
  0x3d   : > { %718 = vsyncadd (%p805_p4), %s200_s7, 4294967168 }
  0x3e   : > { %208 = sfence }
  0x3f   : > { %p233_p5 = scmp.lt.s32.totalorder %s733_s15, 1  ;;  %s243_s21 = sld [smem:[#allocation2]]  ;;  %v884_v0 = vld [vmem:[%s203_s8] sm:$0xff]  ;;  %v277_v3 = vlaneseq  ;;  %v746_v6 = vmov 1966171168  }
  0x40   : > { %s524_s10 = sld [smem:[#allocation2 + $0x1]]  ;;  %v275_v7 = vunpack.c.l.s4 %v746_v6 }
  0x41   : > { %s956_s15 = smov (!%p233_p5, %s733_s15), 1  ;;  %s526_s19 = sld [smem:[#allocation2 + $0x2]]  ;;  %v278_v13 = vshrl.u32 %v277_v3, 7  ;;  %vm906_vm0 = vcmp.lt.s32.totalorder %v277_v3, 256 }
  0x42   : > { %s528_s11 = sld [smem:[#allocation2 + $0x3]]  ;;  %v276_v16 = vunpack.c.0.s8 %v275_v7  ;;  %s551_s30 = sshll.u32 %s956_s15, 3 }
  0x43   : > { %s886_s12 = sld [smem:[#allocation6]]  ;;  %s240_s7 = scalar_lea.vmem %s939_s3, %s551_s30 }
  0x44   : > { %s530_s18 = sld [smem:[#allocation2 + $0x80]]  ;;  %v279_v28 = vsub.s32 %v276_v16, %v278_v13 }
  0x45   : > { %v244_v1 = vstv %s243_s21  ;;  %s531_s20 = sld [smem:[#allocation2 + $0x81]] }
  0x46   : > { %v247_v2 = vstv %s524_s10  ;;  %v245_v4 = vmul.f32 %v244_v1, %v884_v0  ;;  %s533_s22 = sld [smem:[#allocation2 + $0x82]] }
  0x47   : > { %v248_v5 = vmul.f32 %v247_v2, %v884_v0  ;;  %v255_v8 = vstv %s526_s19  ;;  %s535_s23 = sld [smem:[#allocation2 + $0x83]] }
  0x48   : > { %v256_v10 = vmul.f32 %v255_v8, %v884_v0  ;;  %v263_v11 = vstv %s528_s11  ;;  %s891_s24 = sld [smem:[#allocation6 + $0x1]] }
  0x49   : > { %v525_v9 = vrot.slane %v248_v5, 9  ;;  %v264_v12 = vmul.f32 %v263_v11, %v884_v0  ;;  %s539_s25 = sld [smem:[#allocation2 + $0x100]]  ;;  %v271_v24 = vstv %s886_s12 }
  0x4a   : > { %v527_v15 = vrot.slane %v256_v10, 10  ;;  %v295_v17 = vstv %s530_s18  ;;  %s540_s27 = sld [smem:[#allocation2 + $0x101]] }
  0x4b   : > { %v253_v14 = vadd.f32 %v525_v9, %v245_v4  ;;  %v529_v18 = vrot.slane %v264_v12, 11  ;;  %v298_v19 = vstv %s531_s20  ;;  %s542_s28 = sld [smem:[#allocation2 + $0x102]]  ;;  %v296_v21 = vmul.f32 %v295_v17, %v884_v0 }
  0x4c   : > { %v299_v22 = vmul.f32 %v298_v19, %v884_v0  ;;  %v306_v23 = vstv %s533_s22  ;;  %s544_s29 = sld [smem:[#allocation2 + $0x103]] }
  0x4d   : > { %v261_v20 = vadd.f32 %v527_v15, %v253_v14  ;;  %v307_v25 = vmul.f32 %v306_v23, %v884_v0  ;;  %v314_v26 = vstv %s535_s23  ;;  %s546_s4 = sld [smem:[#allocation6 + $0x2]] }
  0x4e   : > { %v532_v29 = vrot.slane %v299_v22, 9  ;;  %v315_v30 = vmul.f32 %v314_v26, %v884_v0  ;;  %v322_v44 = vstv %s891_s24 }
  0x4f   : > { %v269_v27 = vadd.f32 %v529_v18, %v261_v20  ;;  %v534_v31 = vrot.slane %v307_v25, 10  ;;  %v343_v32 = vstv %s539_s25 }
  0x50   : > { %v304_v34 = vadd.f32 %v532_v29, %v296_v21  ;;  %v536_v35 = vrot.slane %v315_v30, 11  ;;  %v344_v36 = vmul.f32 %v343_v32, %v884_v0  ;;  %v346_v37 = vstv %s540_s27 }
  0x51   : > { %v272_v33 = vadd.f32 %v271_v24, %v269_v27  ;;  %v354_v38 = vstv %s542_s28  ;;  %v347_v41 = vmul.f32 %v346_v37, %v884_v0 }
  0x52   : > { %v312_v40 = vadd.f32 %v534_v31, %v304_v34  ;;  %v355_v42 = vmul.f32 %v354_v38, %v884_v0  ;;  %v362_v45 = vstv %s544_s29 }
  0x53   : > { %v280_v39 = vrot.slane %v272_v33, %v279_v28  ;;  %v541_v48 = vrot.slane %v347_v41, 9  ;;  %v363_v50 = vmul.f32 %v362_v45, %v884_v0  ;;  %v370_v56 = vstv %s546_s4 }
  0x54   : > { %v320_v47 = vadd.f32 %v536_v35, %v312_v40  ;;  %v543_v49 = vrot.slane %v355_v42, 10 }
  0x55   : > { %v287_v46 = vrot.slane %v280_v39, %v279_v28  ;;  %v352_v52 = vadd.f32 %v541_v48, %v344_v36  ;;  %v545_v53 = vrot.slane %v363_v50, 11 }
  0x56   : > { %v323_v51 = vadd.f32 %v322_v44, %v320_v47 }
  0x57   : > { %293 = vst.msk [vmem:[%s240_s7] ss:$4 sm:$0x3] %vm906_vm0, %v287_v46  ;;  %v360_v55 = vadd.f32 %v543_v49, %v352_v52 }
  0x58   : > { %v331_v54 = vrot.slane %v323_v51, %v279_v28 }
  0x59   : > { %v368_v58 = vadd.f32 %v545_v53, %v360_v55 }
  0x5a   : > { %v338_v57 = vrot.slane %v331_v54, %v279_v28 }
  0x5b   : > { %v371_v59 = vadd.f32 %v370_v56, %v368_v58 }
  0x5c   : > { %538 = vst.msk [vmem:[%s240_s7 + $0x1] ss:$4 sm:$0x3] %vm906_vm0, %v338_v57 }
  0x5d   : > { %v379_v60 = vrot.slane %v371_v59, %v279_v28 }
  0x5f   : > { %v386_v61 = vrot.slane %v379_v60, %v279_v28 }
  0x61   : > { %547 = vst.msk [vmem:[%s240_s7 + $0x2] ss:$4 sm:$0x3] %vm906_vm0, %v386_v61 }
  0x62 PF: > { %s18_s17 = sadd.s32 1, %s741_s17   ;;  %s948_s12 = smov %s725_s13 }
  0x63   : > { %p15_p1 = scmp.ge.s32.totalorder %s18_s17, 4   ;;  %s949_s13 = smov %s729_s14 }
  0x64   : > { %s950_s14 = smov %s851_s9  ;;  %s951_s15 = smov %s737_s16 }
  0x65   : > { %s952_s16 = smov %s954_s26  ;;  %17 = sbr.rel (!%p15_p1) target bundleno = 6 (0x6), region = 84 }
  0x6a   :  { %420 = vsyncpa [#allocation3], 1 }
  0x6b   :  { %422 = vsyncpa [#allocation3 + $0x1], 1 }
  0x6c   :  { %423 = vsyncpa [#allocation4], 1 }
  0x6d   :  { %425 = vsyncpa [#allocation4 + $0x1], 1 }
  0x6e   :  { %426 = vsyncpa [#allocation5], 1 }
  0x6f   :  { %428 = vsyncpa [#allocation5 + $0x1], 1 }

</bundles_post_ra>
